<compile_context>
chip_gen: v7x
topology: tpu7x:2x2x1
jax: 0.10.0
libtpu: 0.0.40
codegen_flags: <defaults>
</compile_context>

<pallas_src>
from functools import partial

import jax
import jax.numpy as jnp
from jax import lax
from jax.experimental import pallas as pl
from jax.experimental.pallas import tpu as pltpu  # noqa: F401  (TPU backend assumed)


# --------------------------------- kernel ------------------------------------

def _text_transform_kernel(ids_ref, bag_ref, fwb_ref, out_ref):
    """EmbeddingBag(mean) + Linear, fully fused, all operands resident in VMEM.

    ids_ref: (T_pad, 1)    int32   token ids (padded rows hold 0; masked by seg)
    bag_ref: (1, T_pad)    int32   bag index per token (padded tokens hold -1)
    fwb_ref: (V + 8, C_pad) float32 rows [0:V] = emb @ W_fc (fused), row V = bias
    out_ref: (B_pad, C_pad) float32
    """
    T_pad = ids_ref.shape[0]
    B_pad = out_ref.shape[0]
    V = fwb_ref.shape[0] - 8

    # Token -> vocab one-hot (T_pad, V); exact 0/1 values, bf16 for single-pass MXU.
    vlane = lax.broadcasted_iota(jnp.int32, (T_pad, V), 1)
    onehot = (vlane == ids_ref[...]).astype(jnp.bfloat16)

    # Bag-membership mask (B_pad, T_pad): member[b, t] = (bag_id[t] == b).
    brow = lax.broadcasted_iota(jnp.int32, (B_pad, T_pad), 0)
    member = brow == bag_ref[...]                     # (1, T_pad) broadcasts over rows
    seg = member.astype(jnp.bfloat16)

    # Per-bag token counts (mean denominator) on the VPU/XLU; 1/count in f32.
    counts = jnp.sum(member.astype(jnp.float32), axis=1, keepdims=True)   # (B_pad, 1)
    inv_counts = jnp.where(counts > 0.0, 1.0 / counts, 0.0)

    # bf16 x bf16 -> f32 MXU: exact integer token counts per (bag, vocab) pair.
    bag_vocab = jnp.dot(seg, onehot, preferred_element_type=jnp.float32)  # (B_pad, V)
    pooled = bag_vocab * inv_counts                                       # mean weights (f32)

    fused_w = fwb_ref[0:V, :]          # (V, C_pad)  = emb @ W_fc, f32 (keeps accuracy)
    bias = fwb_ref[V:V + 1, :]         # (1, C_pad)
    out = jnp.dot(pooled, fused_w, preferred_element_type=jnp.float32) + bias
    out_ref[...] = out.astype(out_ref.dtype)


# --------------------------------- wrapper -----------------------------------

def _round_up(x, m):
    return ((x + m - 1) // m) * m


@partial(jax.jit, static_argnames=("num_class",))
def text_transform_forward(text, offsets, fwb, *, num_class):
    """text: (T,) int32 token ids; offsets: (B,) int32 bag starts; fwb: fused weights.

    Returns (B, num_class) float32.
    """
    T = text.shape[0]
    B = offsets.shape[0]
    _, C_pad = fwb.shape

    T_pad = max(8, _round_up(T, 8))
    B_pad = max(8, _round_up(B, 8))

    starts = offsets.astype(jnp.int32)                       # (B,)
    tok = jnp.arange(T_pad, dtype=jnp.int32)
    # bag id of token t = (#starts <= t) - 1 ; padded tokens -> -1 (match no bag).
    bag_id = jnp.sum((starts[None, :] <= tok[:, None]).astype(jnp.int32), axis=1) - 1
    bag_id = jnp.where(tok < T, bag_id, jnp.int32(-1))

    ids_col = jnp.zeros((T_pad, 1), jnp.int32).at[:T, 0].set(text.astype(jnp.int32))
    bag_row = bag_id.reshape(1, T_pad)

    out = pl.pallas_call(
        _text_transform_kernel,
        out_shape=jax.ShapeDtypeStruct((B_pad, C_pad), jnp.float32),
    )(ids_col, bag_row, fwb)

    return out[:B, :num_class]


# -------------------------- parameters & weight prep --------------------------

def init_params(key, vocab_size, embed_dim, num_class):
    k_emb, k_fc = jax.random.split(key)
    # nn.EmbeddingBag weight ~ U(-0.5, 0.5)
    emb = jax.random.uniform(k_emb, (vocab_size, embed_dim), jnp.float32, -0.5, 0.5)
    # nn.Linear: weight (C, E) ~ U(-0.5, 0.5), bias zero.  Stored transposed (E, C).
    w = jax.random.uniform(k_fc, (num_class, embed_dim), jnp.float32, -0.5, 0.5)
    b = jnp.zeros((num_class,), jnp.float32)
    return {"embedding": emb, "fc_w": jnp.transpose(w), "fc_b": b}


def prepare_fused_weights(params):
    """One-time offline prep: fold Linear into the table, pad lane-dense, attach bias row."""
    emb = params["embedding"]          # (V, E)
    w = params["fc_w"]                 # (E, C)
    b = params["fc_b"]                 # (C,)
    V = emb.shape[0]
    C = w.shape[1]
    C_pad = max(128, _round_up(C, 128))

    fused = emb @ w                    # (V, C)  — mean-pool-then-linear commutes
    fwb = jnp.zeros((V + 8, C_pad), jnp.float32)
    fwb = fwb.at[:V, :C].set(fused)
    fwb = fwb.at[V, :C].set(b)
    return fwb


# ------------------------------ pure-JAX reference ----------------------------

def ref_forward(text, offsets, params):
    emb = params["embedding"]
    w, b = params["fc_w"], params["fc_b"]
    T = int(text.shape[0])
    B = int(offsets.shape[0])
    rows = emb[text]                                        # (T, E) gather
    ends = list(offsets[1:].tolist()) + [T]
    bags = []
    for i in range(B):
        s, e = int(offsets[i]), int(ends[i])
        if e > s:
            bags.append(rows[s:e].mean(axis=0))
        else:
            bags.append(jnp.zeros((emb.shape[1],), jnp.float32))
    embedded = jnp.stack(bags)                              # (B, E)
    return embedded @ w + b                                 # (B, C)


# ----------------------------------- main -------------------------------------

if __name__ == "__main__":
    vocab_size = 32
    embed_dim = 128      # parameters.word_embedding_size (chosen lane-dense)
    num_class = 12
    B = 8                # number of bags
    T = 44               # total tokens (matches docstring shapes: (8, embed), (8, 12))

    root = jax.random.PRNGKey(0)
    k_param, k_data = jax.random.split(root)
    params = init_params(k_param, vocab_size, embed_dim, num_class)
    fwb = jax.block_until_ready(prepare_fused_weights(params))   # one-time prep

    text = jax.random.randint(k_data, (T,), 0, vocab_size, dtype=jnp.int32)
    # Deterministic bag offsets (lengths sum to T).
    lengths = [5, 7, 4, 6, 8, 3, 6, 5]
    assert sum(lengths) == T and len(lengths) == B
    offs = [0]
    for l in lengths[:-1]:
        offs.append(offs[-1] + l)
    offsets = jnp.array(offs, dtype=jnp.int32)

    y = text_transform_forward(text, offsets, fwb, num_class=num_class)
    y = jax.block_until_ready(y)

    y_ref = ref_forward(text, offsets, params)
    assert y.shape == (B, num_class)
    assert jnp.allclose(y, y_ref, rtol=1e-4, atol=2e-5), "mismatch vs reference"

    print("KERNEL_OK")
</pallas_src>

<mosaic_0001>
module attributes {stable_mosaic.version = 11 : i64} {
  func.func @_text_transform_kernel(%arg0: memref<48x1xi32, #tpu.memory_space<vmem>>, %arg1: memref<1x48xi32, #tpu.memory_space<vmem>>, %arg2: memref<40x128xf32, #tpu.memory_space<vmem>>, %arg3: memref<8x128xf32, #tpu.memory_space<vmem>>) attributes {dimension_semantics = [], scalar_prefetch = 0 : i64, scratch_operands = 0 : i64, tpu.core_type = #tpu.core_type<tc>} {
    %0 = tpu.iota {dimensions = array<i32: 1>} : vector<48x32xi32>
    %c0 = arith.constant 0 : index
    %c0_0 = arith.constant 0 : index
    %1 = vector.load %arg0[%c0, %c0_0] : memref<48x1xi32, #tpu.memory_space<vmem>>, vector<48x1xi32>
    %2 = vector.broadcast %1 : vector<48x1xi32> to vector<48x32xi32>
    %3 = arith.cmpi eq, %0, %2 : vector<48x32xi32>
    %4 = arith.extui %3 : vector<48x32xi1> to vector<48x32xi32>
    %5 = arith.sitofp %4 : vector<48x32xi32> to vector<48x32xf32>
    %6 = arith.truncf %5 : vector<48x32xf32> to vector<48x32xbf16>
    %7 = tpu.iota {dimensions = array<i32: 0>} : vector<8x48xi32>
    %c0_1 = arith.constant 0 : index
    %c0_2 = arith.constant 0 : index
    %8 = vector.load %arg1[%c0_1, %c0_2] : memref<1x48xi32, #tpu.memory_space<vmem>>, vector<1x48xi32>
    %9 = vector.broadcast %8 : vector<1x48xi32> to vector<8x48xi32>
    %10 = arith.cmpi eq, %7, %9 : vector<8x48xi32>
    %11 = arith.extui %10 : vector<8x48xi1> to vector<8x48xi32>
    %12 = arith.sitofp %11 : vector<8x48xi32> to vector<8x48xf32>
    %13 = arith.truncf %12 : vector<8x48xf32> to vector<8x48xbf16>
    %14 = arith.extui %10 : vector<8x48xi1> to vector<8x48xi32>
    %15 = arith.sitofp %14 : vector<8x48xi32> to vector<8x48xf32>
    %cst = arith.constant dense<0.000000e+00> : vector<8xf32>
    %16 = vector.multi_reduction <add>, %15, %cst [1] : vector<8x48xf32> to vector<8xf32>
    %17 = vector.shape_cast %16 : vector<8xf32> to vector<8x1xf32>
    %cst_3 = arith.constant 0.000000e+00 : f32
    %18 = vector.broadcast %cst_3 : f32 to vector<8x1xf32>
    %19 = arith.cmpf ogt, %17, %18 : vector<8x1xf32>
    %cst_4 = arith.constant 1.000000e+00 : f32
    %20 = vector.broadcast %cst_4 : f32 to vector<8x1xf32>
    %21 = arith.divf %20, %17 : vector<8x1xf32>
    %cst_5 = arith.constant 0.000000e+00 : f32
    %22 = vector.broadcast %cst_5 : f32 to vector<8x1xf32>
    %23 = arith.select %19, %21, %22 : vector<8x1xi1>, vector<8x1xf32>
    %cst_6 = arith.constant dense<0.000000e+00> : vector<8x32xf32>
    %24 = tpu.matmul %13, %6, %cst_6 {dimension_numbers = #tpu.dot_dimension_numbers<[1], [0], [0], [1], [0, 0, 1, 1], [], []>} : vector<8x48xbf16>, vector<48x32xbf16>, vector<8x32xf32> -> vector<8x32xf32>
    %25 = vector.broadcast %23 : vector<8x1xf32> to vector<8x32xf32>
    %26 = arith.mulf %24, %25 : vector<8x32xf32>
    %c0_7 = arith.constant 0 : index
    %c0_8 = arith.constant 0 : index
    %27 = vector.load %arg2[%c0_7, %c0_8] : memref<40x128xf32, #tpu.memory_space<vmem>>, vector<32x128xf32>
    %c32 = arith.constant 32 : index
    %c0_9 = arith.constant 0 : index
    %28 = vector.load %arg2[%c32, %c0_9] : memref<40x128xf32, #tpu.memory_space<vmem>>, vector<1x128xf32>
    %cst_10 = arith.constant dense<0.000000e+00> : vector<8x128xf32>
    %29 = tpu.matmul %26, %27, %cst_10 {dimension_numbers = #tpu.dot_dimension_numbers<[1], [0], [0], [1], [0, 0, 1, 1], [], []>} : vector<8x32xf32>, vector<32x128xf32>, vector<8x128xf32> -> vector<8x128xf32>
    %30 = vector.broadcast %28 : vector<1x128xf32> to vector<8x128xf32>
    %31 = arith.addf %29, %30 : vector<8x128xf32>
    %c0_11 = arith.constant 0 : index
    %c0_12 = arith.constant 0 : index
    %32 = vector.load %arg3[%c0_11, %c0_12] : memref<8x128xf32, #tpu.memory_space<vmem>>, vector<8x128xf32>
    tpu.vector_store %arg3[%c0_11, %c0_12], %31 {strides = array<i32>} : memref<8x128xf32, #tpu.memory_space<vmem>>, vector<8x128xf32>,
    return
  }
}

</mosaic_0001>

<bundles_post_ra>
// kernel: text_transform_forward.1
= control target key start
LH: loop header
LB: loop body
LE: loop exit
PB: predicated region body
PF: predicated region fallthrough
CT: control target
= control target key end

     0   :  { %v311_v2 = vmov 0   ;;  %s387_s0 = inlined_call_operand.vmem [shape: s32[48,1], index: 0, kind: input, shape index: {}]   ;;  %s388_s1 = inlined_call_operand.vmem [shape: s32[1,48], index: 1, kind: input, shape index: {}]   ;;  %s389_s2 = inlined_call_operand.vmem [shape: f32[40,128], index: 2, kind: input, shape index: {}]   ;;  %s390_s3 = inlined_call_operand.hbm [shape: f32[8,128], index: 3, kind: output, shape index: {}]  }
   0x1   :  { %v20_v0 = vld [vmem:[%s387_s0 + $0x10] sm:$0xff]  ;;  %v18_v1 = vld [vmem:[%s387_s0] sm:$0xff]  ;;  %284 = vset.pattern.permute.xlu1 %v311_v2  ;;  %283 = vset.pattern.permute.xlu0 %v311_v2 }
   0x2   :  { %31 = vperm.xlu1 %284, %v20_v0   ;;  %25 = vperm.xlu0 %283, %v18_v1  }
   0x3   :  { %8 = vsyncpa [#allocation3], 0  ;;  %v21_v3 = vld [vmem:[%s387_s0 + $0x18] sm:$0xff]  ;;  %v19_v4 = vld [vmem:[%s387_s0 + $0x8] sm:$0xff]  ;;  %v312_v7 = vmov 0.0   ;;  %vm313_vm0 = vmmov 0   ;;  %v16_v8 = vlaneseq }
   0x4   :  { %v23_v5 = vld [vmem:[%s387_s0 + $0x28] sm:$0xff]  ;;  %v22_v6 = vld [vmem:[%s387_s0 + $0x20] sm:$0xff]  ;;  %250 = vmatprep.subr.bf16.mxu0 %v312_v7  ;;  %256 = vmatprep.mubr.msk.bf16.mxu0 %vm313_vm0, %v312_v7  ;;  %vm74_vm2 = vcmask 392192   ;;  %v314_v15 = vmov 0.0|0.0   ;;  %v315_v22 = vmov 1.0|1.0  }
   0x5   :  { %268 = vmatprep.mubr.msk.f32.mxu1 %vm313_vm0, %v312_v7  ;;  %v64_v9 = vshrl.u32 %v16_v8, 7  ;;  %v230_v10 = vld [vmem:[%s388_s1] ss:$0 sm:$0xff]  ;;  %v127_v14 = vld [vmem:[%s389_s2 + $0x8] sm:$0xff]  ;;  %271 = vmatprep.subr.bf16.mxu1 %v314_v15  ;;  %v17_v19 = vand.u32 127, %v16_v8  ;;  %v128_v26 = vld [vmem:[%s389_s2 + $0x10] sm:$0xff] }
   0x6   :  { %34 = vperm.xlu1 %284, %v21_v3   ;;  %28 = vperm.xlu0 %283, %v19_v4   ;;  %v126_v13 = vld [vmem:[%s389_s2] sm:$0xff]  ;;  %v129_v27 = vld [vmem:[%s389_s2 + $0x18] sm:$0xff]  ;;  %vm135_vm13 = vcmask 261120   ;;  %s316_s7 = smov [#allocation2]  }
   0x7   :  { %vm70_vm1 = vcmp.eq.s32.totalorder %v64_v9, %v230_v10  ;;  %v272_v16 = vpack.c.bf16 %v127_v14, %v126_v13  ;;  %v275_v28 = vpack.c.bf16 %v129_v27, %v128_v26  ;;  %v239_v37 = vld [vmem:[%s389_s2 + $0x20] ss:$0 sm:$0xff]  ;;  %s216_s8 = sshll.u32 %s316_s7, 4  ;;  %s217_s8 = int_to_ptr.vmem [resolvable:$true] %s216_s8 }
   0x8   :  { %v231_v11 = vsel %vm70_vm1, 1.0, %v312_v7  ;;  %s287_s9 = scalar_lea.vmem %s217_s8, 128  ;;  %p292_p1 = scmp.lt.s32.totalorder %s217_s8, %s217_s8 }
   0x9   :  { %v75_v12 = vsel %vm74_vm2, %v231_v11, 0.0  ;;  %273 = vmatpush3.bf16.msra.mxu1 %v272_v16  ;;  %v73_v25 = vpack.c.bf16 %v231_v11, %v231_v11  ;;  %p288_p0 = scmp.ne.s32.totalorder %s217_s8, %s287_s9  ;;  %p293_p2 = scmp.lt.s32.totalorder %s287_s9, %s287_s9 }
   0xa   :  { %40 = vperm.xlu1 %284, %v23_v5   ;;  %37 = vperm.xlu0 %283, %v22_v6  }
   0xb   :  { %274 = vmatprep.subr.bf16.mxu1 %v314_v15  ;;  %p294_p3 = por %p293_p2, %p292_p1 }
   0xd   :  { %276 = vmatpush3.bf16.msra.mxu1 %v275_v28  ;;  %p295_p4 = pnand %p294_p3, %p288_p0 }
  0x29   :  { %76 = vadd.xlane.f32.xlu0 %v75_v12 }
  0x81   :  { %v32_v17 = vpop.permute.xlu1 %31  ;;  %v26_v18 = vpop.permute.xlu0 %25 }
  0x82   :  { %vm42_vm4 = vcmp.eq.s32.totalorder %v17_v19, %v26_v18  ;;  %vm44_vm6 = vcmp.eq.s32.totalorder %v17_v19, %v32_v17 }
  0x85   :  { %v35_v20 = vpop.permute.xlu1 %34  ;;  %v29_v21 = vpop.permute.xlu0 %28 }
  0x86   :  { %vm43_vm3 = vcmp.eq.s32.totalorder %v17_v19, %v29_v21  ;;  %vm45_vm7 = vcmp.eq.s32.totalorder %v17_v19, %v35_v20 }
  0x87   :  { %vm232_vm5 = vmpackc.low %vm43_vm3, %vm42_vm4 }
  0x88   :  { %251 = vmatpush3.bf16.msk.msra.mxu0 %vm232_vm5, %v315_v22  ;;  %vm234_vm8 = vmpackc.low %vm45_vm7, %vm44_vm6 }
  0x89   :  { %v41_v23 = vpop.permute.xlu1 %40  ;;  %v38_v24 = vpop.permute.xlu0 %37  ;;  %252 = vmatprep.subr.bf16.mxu0 %v312_v7 }
  0x8a   :  { %vm47_vm9 = vcmp.eq.s32.totalorder %v17_v19, %v41_v23  ;;  %vm46_vm10 = vcmp.eq.s32.totalorder %v17_v19, %v38_v24 }
  0x8b   :  { %vm236_vm11 = vmpackc.low %vm47_vm9, %vm46_vm10 }
  0x8c   :  { %253 = vmatpush3.bf16.msk.msra.mxu0 %vm234_vm8, %v315_v22 }
  0x8d   :  { %254 = vmatprep.subr.bf16.mxu0 %v312_v7 }
  0x90   :  { %255 = vmatpush3.bf16.msk.msra.mxu0 %vm236_vm11, %v315_v22 }
  0x93   :  { %257 = vmatmul.mubr.msk.bf16.vlgmr.msra.gmra.mrb[0].mxu0 %vm74_vm2, %v73_v25 }
  0xb6   :  { %v77_v29 = vpop.xlane.xlu0 %76 }
  0xb7   :  { %285 = vrcp.f32 %v77_v29  ;;  %vm78_vm12 = vcmp.gt.f32.partialorder %v77_v29, 0.0 }
  0xc1   :  { %v286_v30 = vpop.eup %285 }
  0xc2   :  { %v81_v31 = vsel %vm78_vm12, %v286_v30, 0.0 }
 0x166   :  { %v119_v32 = vpop.f32.mrb[0].mxu0 }
 0x167   :  { %v125_v33 = vmul.f32 %v119_v32, %v81_v31  ;;  %v258_v34 = vpop.f32.mrb[1].mxu0 }
 0x168   :  { %v122_v35 = vpop.f32.mrb[2].mxu0 }
 0x169   :  { %v259_v36 = vpop.f32.mrb[3].mxu0  ;;  %269 = vmatmul.mubr.msk.f32.vlgmr.msra.gmra.mrb[0].mxu1 %vm135_vm13, %v125_v33 }
 0x23c   :  { %v205_v38 = vpop.f32.mrb[0].mxu1 }
 0x23d   :  { %v206_v39 = vadd.f32 %v239_v37, %v205_v38  ;;  %v270_v40 = vpop.f32.mrb[1].mxu1 }
 0x23f   :  { %209 = vst [vmem:[#allocation2] sm:$0xff] %v206_v39 }
 0x240   :  { %298 = shalt.err (!%p295_p4)
}
 0x241   :  { %s299_s12 = scalar_lea.hbm %s390_s3, 128 }
 0x242   :  { %p300_p5 = scmp.ne.s32.totalorder %s390_s3, %s299_s12  ;;  %p303_p6 = scmp.lt.u32.totalorder %s299_s12, %s390_s3 }
 0x244   :  { %p305_p7 = pnand %p303_p6, %p300_p5 }
 0x246   :  { %308 = shalt.err (!%p305_p7)
}
 0x247   :  { %219 = dma.vmem_to_hbm [thread:$0]  %s217_s8, 128, %s390_s3, [#allocation3]  }
 0x248   :  { %309 = dma.done.wait [#allocation3], 128  }
 0x249   :  { %310 = vsyncadd [#allocation3], 4294967168 }
 0x24a   :  { %223 = vsyncpa [#allocation3], 1 }

</bundles_post_ra>
